<compile_context>
chip_gen: v6e
topology: v6e:2x2x1
jax: 0.10.0
libtpu: 0.0.40
codegen_flags: <defaults>
</compile_context>

<pallas_src>
import jax
import jax.numpy as jnp
from jax.experimental import pallas as pl
from jax.experimental.pallas import tpu as pltpu

_LANE = 128


def _add_scalar_kernel(val_ref, x_ref, o_ref):
    # val is an SMEM scalar; the add is a plain VPU elementwise op on
    # full lane-dense vregs.
    o_ref[...] = x_ref[...] + val_ref[0].astype(x_ref.dtype)


def _round_up(a: int, b: int) -> int:
    return ((a + b - 1) // b) * b


def _pick_block_rows(rows: int, itemsize: int) -> int:
    # VMEM accounting: the auto-pipeline double-buffers input AND output,
    # i.e. 4 * block_bytes live at once (input_output_aliases only saves an
    # HBM allocation, not VMEM).  Target 4 MiB per buffer -> ~16 MiB total,
    # well inside the 48 MiB scoped limit we request below on every chip.
    target_block_bytes = 4 << 20
    max_rows = max(512, target_block_bytes // (_LANE * itemsize))  # mult of 512
    if rows > max_rows:
        return max_rows
    if rows >= 2048:
        # Fits one block, but keep grid >= 2 so the "parallel" axis can be
        # sharded across v7x's two TensorCores.  512-row multiple satisfies
        # sublane packing for every dtype (8/16/32).
        return _round_up(pl.cdiv(rows, 2), 512)
    return rows  # single block == full array dims (always a legal block)


def _pallas_add_2d(x2d: jax.Array, val_arr: jax.Array) -> jax.Array:
    rows, lane = x2d.shape  # lane is always 128 here
    block_rows = _pick_block_rows(rows, x2d.dtype.itemsize)
    grid = (pl.cdiv(rows, block_rows),)
    nbytes = x2d.size * x2d.dtype.itemsize

    return pl.pallas_call(
        _add_scalar_kernel,
        out_shape=jax.ShapeDtypeStruct((rows, lane), x2d.dtype),
        grid_spec=pl.GridSpec(
            grid=grid,
            in_specs=[
                # runtime scalar `val` in SMEM -> no per-value recompiles
                pl.BlockSpec(memory_space=pltpu.MemorySpace.SMEM),
                pl.BlockSpec((block_rows, lane), lambda i: (i, 0)),
            ],
            out_specs=pl.BlockSpec((block_rows, lane), lambda i: (i, 0)),
        ),
        # In-place add: reuse the input's HBM buffer for the output.
        input_output_aliases={1: 0},
        cost_estimate=pl.CostEstimate(
            flops=x2d.size, transcendentals=0, bytes_accessed=2 * nbytes
        ),
        compiler_params=pltpu.CompilerParams(
            dimension_semantics=("parallel",),
            vmem_limit_bytes=48 << 20,
        ),
    )(val_arr, x2d)


def add_module_forward(x: jax.Array, val, *, min_pallas_elements: int = 1 << 18) -> jax.Array:
    """Equivalent of AddModule(val).forward(x): elementwise x + val."""
    n = x.size
    if n == 0 or n < min_pallas_elements:
        # For small tensors pallas_call fixed overhead dominates; XLA wins.
        return x + val

    # SMEM scalars are 32-bit; pick a carrier dtype that preserves `val`.
    if jnp.issubdtype(x.dtype, jnp.floating):
        scal_dtype = jnp.float32
    else:
        scal_dtype = jnp.int32
    val_arr = jnp.asarray([val], dtype=scal_dtype)

    orig_shape = x.shape

    if n % _LANE == 0:
        rows = n // _LANE
        out2d = _pallas_add_2d(x.reshape(rows, _LANE), val_arr)
        return out2d.reshape(orig_shape)

    # Ragged size: lane-dense main body through the kernel, tiny tail via XLA.
    flat = x.reshape(-1)
    n_main = (n // _LANE) * _LANE
    if n_main == 0:
        return x + val
    tail = flat[n_main:] + val  # < 128 elements; computed before the aliased call
    rows = n_main // _LANE
    main = _pallas_add_2d(flat[:n_main].reshape(rows, _LANE), val_arr).reshape(-1)
    return jnp.concatenate([main, tail]).reshape(orig_shape)


if __name__ == "__main__":
    key = jax.random.PRNGKey(0)

    # 1) Module-shaped input (NCHW: batch=2, channels=4, spatial=16x16),
    #    forced through the Pallas path (2048 elems, lane-divisible).
    x = jax.random.normal(key, (2, 4, 16, 16), dtype=jnp.float32)
    val = 3  # the module's __init__ argument
    ref = x + val
    out = jax.block_until_ready(add_module_forward(x, val, min_pallas_elements=0))
    assert out.shape == x.shape and out.dtype == x.dtype
    assert jnp.allclose(out, ref), "mismatch vs reference (small forced pallas)"

    # 1b) Same input via the default wrapper (small-tensor XLA fast path).
    out_fast = jax.block_until_ready(add_module_forward(x, val))
    assert jnp.allclose(out_fast, ref), "mismatch vs reference (XLA fast path)"

    # 1c) Fractional val through the Pallas path (float32 SMEM scalar).
    ref_f = x + 0.5
    out_f = jax.block_until_ready(add_module_forward(x, 0.5, min_pallas_elements=0))
    assert jnp.allclose(out_f, ref_f), "mismatch vs reference (fractional val)"

    # 2) Larger lane-divisible input: exercises the multi-block parallel grid.
    xl = jax.random.normal(jax.random.PRNGKey(1), (256, 1024), dtype=jnp.float32)
    refl = xl + val
    outl = jax.block_until_ready(add_module_forward(xl, val))
    assert jnp.allclose(outl, refl), "mismatch vs reference (large tiled)"

    # 3) Ragged input (n % 128 != 0): main body via kernel + XLA tail.
    xr = jax.random.normal(jax.random.PRNGKey(2), (130, 100), dtype=jnp.float32)
    refr = xr + val
    outr = jax.block_until_ready(add_module_forward(xr, val, min_pallas_elements=0))
    assert outr.shape == xr.shape and outr.dtype == xr.dtype
    assert jnp.allclose(outr, refr), "mismatch vs reference (ragged)"

    print("KERNEL_OK")
</pallas_src>

<mosaic_0001>
module attributes {stable_mosaic.version = 11 : i64} {
  func.func @_add_scalar_kernel(%arg0: i32, %arg1: memref<1xf32, #tpu.memory_space<smem>>, %arg2: memref<16x128xf32, #tpu.memory_space<vmem>>, %arg3: memref<16x128xf32, #tpu.memory_space<vmem>>) attributes {dimension_semantics = [#tpu.dimension_semantics<parallel>], iteration_bounds = array<i64: 1>, scalar_prefetch = 0 : i64, scratch_operands = 0 : i64, tpu.core_type = #tpu.core_type<tc>, window_params = [{transform_indices = @transform_0, window_bounds = array<i64: 1>}, {transform_indices = @transform_1, window_bounds = array<i64: 16, 128>}, {transform_indices = @transform_2, window_bounds = array<i64: 16, 128>}]} {
    %c0 = arith.constant 0 : index
    %c0_0 = arith.constant 0 : index
    %0 = vector.load %arg2[%c0, %c0_0] : memref<16x128xf32, #tpu.memory_space<vmem>>, vector<16x128xf32>
    %c0_1 = arith.constant 0 : index
    %1 = memref.load %arg1[%c0_1] : memref<1xf32, #tpu.memory_space<smem>>
    %2 = vector.broadcast %1 : f32 to vector<16x128xf32>
    %3 = arith.addf %0, %2 : vector<16x128xf32>
    %c0_2 = arith.constant 0 : index
    %c0_3 = arith.constant 0 : index
    %4 = vector.load %arg3[%c0_2, %c0_3] : memref<16x128xf32, #tpu.memory_space<vmem>>, vector<16x128xf32>
    tpu.vector_store %arg3[%c0_2, %c0_3], %3 {strides = array<i32>} : memref<16x128xf32, #tpu.memory_space<vmem>>, vector<16x128xf32>,
    return
  }
  func.func @transform_0(%arg0: i32) -> i32 {
    %c0_i32 = arith.constant 0 : i32
    %c0_i32_0 = arith.constant 0 : i32
    return %c0_i32 : i32
  }
  func.func @transform_1(%arg0: i32) -> (i32, i32) {
    %c0_i32 = arith.constant 0 : i32
    %c0_i32_0 = arith.constant 0 : i32
    return %arg0, %c0_i32 : i32, i32
  }
  func.func @transform_2(%arg0: i32) -> (i32, i32) {
    %c0_i32 = arith.constant 0 : i32
    %c0_i32_0 = arith.constant 0 : i32
    return %arg0, %c0_i32 : i32, i32
  }
}

</mosaic_0001>

<bundles_post_ra>
// kernel: tpu_custom_call.1
= control target key start
LH: loop header
LB: loop body
LE: loop exit
PB: predicated region body
PF: predicated region fallthrough
CT: control target
= control target key end

     0   :  { %8 = vsyncpa [#allocation4], 0  ;;  %s128_s0 = inlined_call_operand.<no memory space> [shape: f32[1], index: 0, kind: input, shape index: {}]   ;;  %s129_s1 = inlined_call_operand.hbm [shape: f32[16,128], index: 1, kind: input, shape index: {}, may-alias: {1,2}]   ;;  %s130_s2 = inlined_call_operand.hbm [shape: f32[16,128], index: 2, kind: output, shape index: {}, may-alias: {1,2}]  }
   0x1   :  { %9 = vsyncpa [#allocation5], 0  ;;  %s100_s9 = smov [#allocation3]  }
   0x2   :  { %s17_s10 = sshll.u32 %s100_s9, 4  ;;  %s18_s10 = int_to_ptr.vmem [resolvable:$true] %s17_s10 }
   0x3   :  { %s64_s11 = scalar_lea.vmem %s18_s10, 256  ;;  %p69_p1 = scmp.lt.s32.totalorder %s18_s10, %s18_s10 }
   0x4   :  { %p65_p0 = scmp.ne.s32.totalorder %s18_s10, %s64_s11  ;;  %p70_p2 = scmp.lt.s32.totalorder %s64_s11, %s64_s11 }
   0x6   :  { %p71_p3 = por %p70_p2, %p69_p1 }
   0x8   :  { %p72_p4 = pnand %p71_p3, %p65_p0 }
   0xa   :  { %75 = shalt.err (!%p72_p4)
}
   0xb   :  { %s101_s12 = smov 128   ;;  %s102_s13 = smov 8  }
   0xc   :  { %23 = dma.hbm_to_vmem [thread:$0]  %s129_s1, 256, %s18_s10, [#allocation4], %s101_s12, %s101_s12, %s102_s13  }
   0xd   :  { %96 = dma.done.wait [#allocation4], 256  }
   0xe   :  { %97 = vsyncadd [#allocation4], 4294967040  ;;  %v30_v0 = vstv %s128_s0  ;;  %s103_s18 = smov [#allocation6]   ;;  %v27_v1 = vld [vmem:[#allocation3] sm:$0xff]  ;;  %v28_v2 = vld [vmem:[#allocation3 + $0x8] sm:$0xff] }
   0xf   :  { %s40_s19 = sshll.u32 %s103_s18, 4  ;;  %v31_v3 = vadd.f32 %v30_v0, %v27_v1  ;;  %v32_v4 = vadd.f32 %v30_v0, %v28_v2  ;;  %s41_s19 = int_to_ptr.vmem [resolvable:$true] %s40_s19 }
  0x10   :  { %s76_s20 = scalar_lea.vmem %s41_s19, 256  ;;  %p81_p6 = scmp.lt.s32.totalorder %s41_s19, %s41_s19 }
  0x11   :  { %33 = vst [vmem:[#allocation6] sm:$0xff] %v31_v3  ;;  %34 = vst [vmem:[#allocation6 + $0x8] sm:$0xff] %v32_v4  ;;  %p77_p5 = scmp.ne.s32.totalorder %s41_s19, %s76_s20  ;;  %p82_p7 = scmp.lt.s32.totalorder %s76_s20, %s76_s20 }
  0x13   :  { %p83_p8 = por %p82_p7, %p81_p6 }
  0x15   :  { %p84_p9 = pnand %p83_p8, %p77_p5 }
  0x17   :  { %87 = shalt.err (!%p84_p9)
}
  0x18   :  { %46 = dma.vmem_to_hbm [thread:$0]  %s41_s19, 256, %s130_s2, [#allocation5], %s101_s12, %s101_s12, %s102_s13  }
  0x19   :  { %98 = dma.done.wait [#allocation5], 256  }
  0x1a   :  { %99 = vsyncadd [#allocation5], 4294967040 }
  0x1b   :  { %50 = vsyncpa [#allocation4], 1 }
  0x1c   :  { %51 = vsyncpa [#allocation5], 1 }

</bundles_post_ra>
